<compile_context>
chip_gen: v7x
topology: tpu7x:2x2x1
jax: 0.10.0
libtpu: 0.0.40
codegen_flags: <defaults>
</compile_context>

<pallas_src>
from functools import partial

import numpy as np
import jax
import jax.numpy as jnp
from jax.experimental import pallas as pl
from jax.experimental.pallas import tpu as pltpu


def _round_up(x, m):
    return (x + m - 1) // m * m


def _spatial_tile(s):
    """Lane-dense spatial tile: a multiple of 128, capped at 512 (VMEM-safe on v7x)."""
    return 512 if s >= 512 else _round_up(s, 128)


# ---------------------------------------------------------------------------
# Kernel 1: fused Detect/Segment head for one pyramid level.
#   out (Npad, Ts) = W(Npad, C) @ x(C, Ts) + b        (MXU, bf16 in / f32 acc)
#   dec             = slab-wide masked decode          (VPU/EUP, full 128-lane ops)
# ---------------------------------------------------------------------------
def head_kernel(feat_ref, w_ref, b_ref, coef_ref, dec_ref, raw_ref, *, nx, ts):
    out = jnp.dot(w_ref[...], feat_ref[0],
                  preferred_element_type=jnp.float32) + b_ref[...]       # (Npad, Ts) f32
    sig = jax.nn.sigmoid(out)

    coef = coef_ref[...]                                                 # (Npad, 8) resident
    c_raw, c_sig, c_sig2 = coef[:, 0:1], coef[:, 1:2], coef[:, 2:3]
    c_gx, c_gy = coef[:, 3:4], coef[:, 4:5]

    # In-kernel grid offsets: spatial index s runs along lanes; x = s % nx, y = s // nx.
    si = pl.program_id(1)
    s = (jax.lax.broadcasted_iota(jnp.int32, (1, ts), 1) + si * ts).astype(jnp.float32)
    gy = jnp.floor((s + 0.5) * (1.0 / nx))     # +0.5 keeps floor robust to fp rounding
    gx = s - gy * nx - 0.5
    gy = gy - 0.5

    dec = c_raw * out + (c_sig + c_sig2 * sig) * sig + c_gx * gx + c_gy * gy
    dec_ref[0] = dec.astype(dec_ref.dtype)
    raw_ref[0] = out.astype(raw_ref.dtype)


def _head_decode_coefs(na, no, nc, stride, anchor_wh, n_pad):
    """(Npad, 8) per-output-channel decode coefficients
    [c_raw, c_sig, c_sig2, c_gx, c_gy, 0, 0, 0]; padded rows stay all-zero."""
    c = np.zeros((n_pad, 8), np.float32)
    for a in range(na):
        base = a * no
        c[base + 0, 1] = 2.0 * stride                  # xy: 2*stride*sigmoid
        c[base + 1, 1] = 2.0 * stride
        c[base + 0, 3] = stride                        #   + stride * gx
        c[base + 1, 4] = stride                        #   + stride * gy
        c[base + 2, 2] = 4.0 * anchor_wh[a, 0]         # wh: 4*anchor*(sigmoid^2)
        c[base + 3, 2] = 4.0 * anchor_wh[a, 1]
        c[base + 4:base + 5 + nc, 1] = 1.0             # obj + class conf: sigmoid
        c[base + 5 + nc:base + no, 0] = 1.0            # mask coefficients: raw
    return c


def segment_head_level(feat, w, b, anchor_wh, *, na, no, nc, stride,
                       matmul_dtype=jnp.bfloat16):
    """feat: (bs, C, ny, nx) NCHW. Returns (y, logits) in PyTorch flattened layouts."""
    bs, C, ny, nx = feat.shape
    S = ny * nx
    N = na * no
    n_pad = _round_up(N, 128)                  # MXU / lane padding of head-conv channels
    ts = _spatial_tile(S)
    s_pad = _round_up(S, ts)

    feat2 = feat.reshape(bs, C, S)             # NCHW -> (bs, C, S): contiguous, free view
    if s_pad != S:
        feat2 = jnp.pad(feat2, ((0, 0), (0, 0), (0, s_pad - S)))
    feat2 = feat2.astype(matmul_dtype)

    w_pad = jnp.pad(w, ((0, n_pad - N), (0, 0))).astype(matmul_dtype)    # (Npad, C)
    b_pad = jnp.pad(b, (0, n_pad - N)).reshape(n_pad, 1).astype(jnp.float32)
    coefs = jnp.asarray(_head_decode_coefs(na, no, nc, float(stride),
                                           np.asarray(anchor_wh, np.float32), n_pad))

    kernel = partial(head_kernel, nx=float(nx), ts=ts)
    n_sp = s_pad // ts
    flops = 2 * bs * s_pad * C * n_pad + 10 * bs * s_pad * n_pad
    transcendentals = bs * s_pad * n_pad
    bytes_accessed = (feat2.size * feat2.dtype.itemsize
                      + w_pad.size * w_pad.dtype.itemsize
                      + 4 * (b_pad.size + coefs.size)
                      + 2 * 4 * bs * n_pad * s_pad)

    dec, raw = pl.pallas_call(
        kernel,
        out_shape=(jax.ShapeDtypeStruct((bs, n_pad, s_pad), jnp.float32),
                   jax.ShapeDtypeStruct((bs, n_pad, s_pad), jnp.float32)),
        grid=(bs, n_sp),
        in_specs=[
            pl.BlockSpec((1, C, ts), lambda bi, si: (bi, 0, si)),    # activations (NCHW)
            pl.BlockSpec((n_pad, C), lambda bi, si: (0, 0)),         # weight (resident)
            pl.BlockSpec((n_pad, 1), lambda bi, si: (0, 0)),         # bias
            pl.BlockSpec((n_pad, 8), lambda bi, si: (0, 0)),         # decode coefficients
        ],
        out_specs=(pl.BlockSpec((1, n_pad, ts), lambda bi, si: (bi, 0, si)),
                   pl.BlockSpec((1, n_pad, ts), lambda bi, si: (bi, 0, si))),
        compiler_params=pltpu.CompilerParams(
            dimension_semantics=("parallel", "parallel"),
            vmem_limit_bytes=48 * 1024 * 1024,     # headroom on v7x's 64 MiB VMEM
        ),
        cost_estimate=pl.CostEstimate(flops=int(flops),
                                      transcendentals=int(transcendentals),
                                      bytes_accessed=int(bytes_accessed)),
    )(feat2, w_pad, b_pad, coefs)

    # Layout plumbing (XLA side): (bs, Npad, S_pad) -> PyTorch (bs, na*ny*nx, no).
    dec = dec[:, :N, :S].reshape(bs, na, no, S)
    raw = raw[:, :N, :S].reshape(bs, na, no, S)
    y = dec.transpose(0, 1, 3, 2).reshape(bs, na * S, no)
    logits = raw[:, :, 5:, :].transpose(0, 1, 3, 2).reshape(bs, na * S, no - 5)
    return y, logits


# ---------------------------------------------------------------------------
# Kernel 2: pointwise (1x1) conv + SiLU (Proto.cv3), NCHW in / NCHW out.
# ---------------------------------------------------------------------------
def pointwise_conv_silu_kernel(x_ref, w_ref, b_ref, o_ref):
    y = jnp.dot(w_ref[...], x_ref[0], preferred_element_type=jnp.float32) + b_ref[...]
    o_ref[0] = (y * jax.nn.sigmoid(y)).astype(o_ref.dtype)               # SiLU


def pointwise_conv_silu(x, w, b, matmul_dtype=jnp.bfloat16):
    """x: (bs, Cin, H, W); w: (Cout, Cin); b: (Cout,) -> (bs, Cout, H, W)."""
    bs, Cin, H, W = x.shape
    Cout = w.shape[0]
    S = H * W
    ts = _spatial_tile(S)
    s_pad = _round_up(S, ts)
    x2 = x.reshape(bs, Cin, S)
    if s_pad != S:
        x2 = jnp.pad(x2, ((0, 0), (0, 0), (0, s_pad - S)))
    x2 = x2.astype(matmul_dtype)

    out = pl.pallas_call(
        pointwise_conv_silu_kernel,
        out_shape=jax.ShapeDtypeStruct((bs, Cout, s_pad), jnp.float32),
        grid=(bs, s_pad // ts),
        in_specs=[
            pl.BlockSpec((1, Cin, ts), lambda bi, si: (bi, 0, si)),
            pl.BlockSpec((Cout, Cin), lambda bi, si: (0, 0)),
            pl.BlockSpec((Cout, 1), lambda bi, si: (0, 0)),
        ],
        out_specs=pl.BlockSpec((1, Cout, ts), lambda bi, si: (bi, 0, si)),
        compiler_params=pltpu.CompilerParams(
            dimension_semantics=("parallel", "parallel"),
            vmem_limit_bytes=48 * 1024 * 1024,
        ),
        cost_estimate=pl.CostEstimate(
            flops=int(2 * bs * s_pad * Cin * Cout),
            transcendentals=int(bs * s_pad * Cout),
            bytes_accessed=int(x2.size * x2.dtype.itemsize + 4 * bs * Cout * s_pad)),
    )(x2, w.astype(matmul_dtype), b.reshape(Cout, 1).astype(jnp.float32))

    return out[:, :, :S].reshape(bs, Cout, H, W)


# ---------------------------------------------------------------------------
# Proto (mask prototype net): Conv3x3+SiLU -> nearest 2x -> Conv3x3+SiLU -> 1x1+SiLU.
# BatchNorm is assumed folded for inference.
# ---------------------------------------------------------------------------
def conv3x3_silu(x, w, b):
    y = jax.lax.conv_general_dilated(x, w, window_strides=(1, 1), padding="SAME",
                                     dimension_numbers=("NCHW", "OIHW", "NCHW"))
    y = y + b[None, :, None, None]
    return y * jax.nn.sigmoid(y)


def upsample_nearest2x(x):
    return jnp.repeat(jnp.repeat(x, 2, axis=2), 2, axis=3)


def proto_forward(x, pp, matmul_dtype=jnp.bfloat16):
    h = conv3x3_silu(x, pp["cv1_w"], pp["cv1_b"])
    h = upsample_nearest2x(h)
    h = conv3x3_silu(h, pp["cv2_w"], pp["cv2_b"])
    return pointwise_conv_silu(h, pp["cv3_w"], pp["cv3_b"], matmul_dtype=matmul_dtype)


# ---------------------------------------------------------------------------
# Full Segment forward (inference, non-export): returns (detections, proto, logits).
# ---------------------------------------------------------------------------
def segment_forward(x_list, params, *, anchors, strides, nc, nm,
                    matmul_dtype=jnp.bfloat16):
    anchors_np = np.asarray(anchors, np.float32)
    nl = len(x_list)
    na = anchors_np.shape[1]
    no = 5 + nc + nm

    p = proto_forward(x_list[0], params["proto"], matmul_dtype=matmul_dtype)

    z, lg = [], []
    for i in range(nl):
        anchor_wh = anchors_np[i] * float(strides[i])                    # (na, 2)
        y_i, l_i = segment_head_level(
            x_list[i], params["head_w"][i], params["head_b"][i], anchor_wh,
            na=na, no=no, nc=nc, stride=float(strides[i]), matmul_dtype=matmul_dtype)
        z.append(y_i)
        lg.append(l_i)

    return jnp.concatenate(z, axis=1), p, jnp.concatenate(lg, axis=1)


# ---------------------------------------------------------------------------
# Pure-JAX reference (mirrors the PyTorch forward) for verification.
# `matmul_dtype` optionally casts the conv matmul inputs the same way the kernel does,
# so the kernel's decode logic can be checked at tight tolerance.
# ---------------------------------------------------------------------------
def reference_forward(x_list, params, *, anchors, strides, nc, nm, matmul_dtype=None):
    anchors = jnp.asarray(np.asarray(anchors, np.float32))
    na = anchors.shape[1]
    no = 5 + nc + nm
    z, lg = [], []
    for i, x in enumerate(x_list):
        bs, _, ny, nx = x.shape
        w, xin = params["head_w"][i], x
        if matmul_dtype is not None:
            w, xin = w.astype(matmul_dtype), x.astype(matmul_dtype)
        out = jnp.einsum("bchw,oc->bohw", xin, w,
                         preferred_element_type=jnp.float32) \
            + params["head_b"][i][None, :, None, None]
        out = out.reshape(bs, na, no, ny, nx).transpose(0, 1, 3, 4, 2)   # (bs,na,ny,nx,no)
        yv, xv = jnp.meshgrid(jnp.arange(ny, dtype=jnp.float32),
                              jnp.arange(nx, dtype=jnp.float32), indexing="ij")
        grid = (jnp.stack((xv, yv), 2) - 0.5)[None, None]                # (1,1,ny,nx,2)
        ag = (anchors[i] * strides[i]).reshape(1, na, 1, 1, 2)
        xy = (jax.nn.sigmoid(out[..., 0:2]) * 2 + grid) * strides[i]
        wh = (jax.nn.sigmoid(out[..., 2:4]) * 2) ** 2 * ag
        conf = jax.nn.sigmoid(out[..., 4:5 + nc])
        mask = out[..., 5 + nc:]
        y = jnp.concatenate([xy, wh, conf, mask], axis=-1)
        z.append(y.reshape(bs, na * ny * nx, no))
        lg.append(out[..., 5:].reshape(bs, na * ny * nx, no - 5))

    pp = params["proto"]
    h = conv3x3_silu(x_list[0], pp["cv1_w"], pp["cv1_b"])
    h = upsample_nearest2x(h)
    h = conv3x3_silu(h, pp["cv2_w"], pp["cv2_b"])
    w3, h3 = pp["cv3_w"], h
    if matmul_dtype is not None:
        w3, h3 = w3.astype(matmul_dtype), h.astype(matmul_dtype)
    pf = jnp.einsum("bchw,oc->bohw", h3, w3, preferred_element_type=jnp.float32) \
        + pp["cv3_b"][None, :, None, None]
    p = pf * jax.nn.sigmoid(pf)

    return jnp.concatenate(z, axis=1), p, jnp.concatenate(lg, axis=1)


if __name__ == "__main__":
    # Small config consistent with Segment(nc, anchors, nm, npr, ch):
    nc, nm, npr = 3, 4, 8
    anchors_cfg = ((10, 13, 16, 30, 33, 23), (30, 61, 62, 45, 59, 119))  # nl=2, na=3
    strides = (8.0, 16.0)
    ch = (8, 16)
    bs = 2
    spatial = ((16, 16), (8, 8))
    nl = len(anchors_cfg)
    na = len(anchors_cfg[0]) // 2
    no = 5 + nc + nm

    key = jax.random.PRNGKey(0)
    keys = jax.random.split(key, 12)

    x_list = [jax.random.normal(keys[i], (bs, ch[i], spatial[i][0], spatial[i][1]),
                                jnp.float32) for i in range(nl)]
    anchors = np.asarray(anchors_cfg, np.float32).reshape(nl, na, 2)

    params = {
        "head_w": [0.1 * jax.random.normal(keys[2 + i], (na * no, ch[i]), jnp.float32)
                   for i in range(nl)],
        "head_b": [0.1 * jax.random.normal(keys[4 + i], (na * no,), jnp.float32)
                   for i in range(nl)],
        "proto": {
            "cv1_w": 0.1 * jax.random.normal(keys[6], (npr, ch[0], 3, 3), jnp.float32),
            "cv1_b": 0.1 * jax.random.normal(keys[7], (npr,), jnp.float32),
            "cv2_w": 0.1 * jax.random.normal(keys[8], (npr, npr, 3, 3), jnp.float32),
            "cv2_b": 0.1 * jax.random.normal(keys[9], (npr,), jnp.float32),
            "cv3_w": 0.1 * jax.random.normal(keys[10], (nm, npr), jnp.float32),
            "cv3_b": 0.1 * jax.random.normal(keys[11], (nm,), jnp.float32),
        },
    }

    outs = segment_forward(x_list, params, anchors=anchors, strides=strides, nc=nc, nm=nm)
    outs = jax.block_until_ready(outs)

    names = ("detections", "proto", "logits")

    # 1) Tight check: reference uses the same bf16 matmul inputs (f32 accumulate), so any
    #    remaining difference is op-order / exp-ulp noise -> validates the decode logic.
    refs_bf16 = reference_forward(x_list, params, anchors=anchors, strides=strides,
                                  nc=nc, nm=nm, matmul_dtype=jnp.bfloat16)
    for name, o, r in zip(names, outs, refs_bf16):
        assert o.shape == r.shape, (name, o.shape, r.shape)
        assert jnp.allclose(o, r, atol=2e-2, rtol=2e-3), \
            (name, float(jnp.max(jnp.abs(o - r))))

    # 2) Sanity vs the full-f32 module semantics; bf16 MXU inputs are the only deliberate
    #    approximation (tolerance sized for wh ~ 4*anchor*stride and xy ~ stride scales).
    refs_f32 = reference_forward(x_list, params, anchors=anchors, strides=strides,
                                 nc=nc, nm=nm)
    for name, o, r in zip(names, outs, refs_f32):
        assert o.shape == r.shape, (name, o.shape, r.shape)
        assert jnp.allclose(o, r, atol=2e-1, rtol=5e-2), \
            (name, float(jnp.max(jnp.abs(o - r))))

    print("KERNEL_OK")
</pallas_src>

<mosaic_0001>
module attributes {stable_mosaic.version = 11 : i64} {
  func.func @pointwise_conv_silu_kernel(%arg0: i32, %arg1: i32, %arg2: memref<1x8x512xbf16, #tpu.memory_space<vmem>>, %arg3: memref<4x8xbf16, #tpu.memory_space<vmem>>, %arg4: memref<4x1xf32, #tpu.memory_space<vmem>>, %arg5: memref<1x4x512xf32, #tpu.memory_space<vmem>>) attributes {dimension_semantics = [#tpu.dimension_semantics<parallel>, #tpu.dimension_semantics<parallel>], iteration_bounds = array<i64: 2, 2>, scalar_prefetch = 0 : i64, scratch_operands = 0 : i64, tpu.core_type = #tpu.core_type<tc>, window_params = [{transform_indices = @transform_0, window_bounds = array<i64: 1, 8, 512>}, {pipeline_mode = #tpu.pipeline_mode<synchronous>, transform_indices = @transform_1, window_bounds = array<i64: 4, 8>}, {pipeline_mode = #tpu.pipeline_mode<synchronous>, transform_indices = @transform_2, window_bounds = array<i64: 4, 1>}, {transform_indices = @transform_3, window_bounds = array<i64: 1, 4, 512>}]} {
    %c0 = arith.constant 0 : index
    %c0_0 = arith.constant 0 : index
    %0 = vector.load %arg3[%c0, %c0_0] : memref<4x8xbf16, #tpu.memory_space<vmem>>, vector<4x8xbf16>
    %c0_1 = arith.constant 0 : index
    %c0_2 = arith.constant 0 : index
    %c0_3 = arith.constant 0 : index
    %1 = vector.load %arg2[%c0_1, %c0_2, %c0_3] : memref<1x8x512xbf16, #tpu.memory_space<vmem>>, vector<1x8x512xbf16>
    %2 = vector.shape_cast %1 : vector<1x8x512xbf16> to vector<8x512xbf16>
    %cst = arith.constant dense<0.000000e+00> : vector<4x512xf32>
    %3 = tpu.matmul %0, %2, %cst {dimension_numbers = #tpu.dot_dimension_numbers<[1], [0], [0], [1], [0, 0, 1, 1], [], []>} : vector<4x8xbf16>, vector<8x512xbf16>, vector<4x512xf32> -> vector<4x512xf32>
    %c0_4 = arith.constant 0 : index
    %c0_5 = arith.constant 0 : index
    %4 = vector.load %arg4[%c0_4, %c0_5] : memref<4x1xf32, #tpu.memory_space<vmem>>, vector<4x1xf32>
    %5 = vector.broadcast %4 : vector<4x1xf32> to vector<4x512xf32>
    %6 = arith.addf %3, %5 : vector<4x512xf32>
    %7 = arith.negf %6 : vector<4x512xf32>
    %8 = math.exp %7 : vector<4x512xf32>
    %cst_6 = arith.constant 1.000000e+00 : f32
    %9 = vector.broadcast %cst_6 : f32 to vector<4x512xf32>
    %10 = arith.addf %9, %8 : vector<4x512xf32>
    %11 = arith.divf %9, %10 : vector<4x512xf32>
    %12 = arith.mulf %6, %11 : vector<4x512xf32>
    %c0_7 = arith.constant 0 : index
    %c0_8 = arith.constant 0 : index
    %c0_9 = arith.constant 0 : index
    %13 = vector.load %arg5[%c0_7, %c0_8, %c0_9] : memref<1x4x512xf32, #tpu.memory_space<vmem>>, vector<1x4x512xf32>
    %14 = vector.shape_cast %13 : vector<1x4x512xf32> to vector<4x512xf32>
    %15 = vector.shape_cast %12 : vector<4x512xf32> to vector<1x4x512xf32>
    tpu.vector_store %arg5[%c0_7, %c0_8, %c0_9], %15 {strides = array<i32>} : memref<1x4x512xf32, #tpu.memory_space<vmem>>, vector<1x4x512xf32>,
    return
  }
  func.func @transform_0(%arg0: i32, %arg1: i32) -> (i32, i32, i32) {
    %c0_i32 = arith.constant 0 : i32
    %c0_i32_0 = arith.constant 0 : i32
    return %arg0, %c0_i32, %arg1 : i32, i32, i32
  }
  func.func @transform_1(%arg0: i32, %arg1: i32) -> (i32, i32) {
    %c0_i32 = arith.constant 0 : i32
    %c0_i32_0 = arith.constant 0 : i32
    %c0_i32_1 = arith.constant 0 : i32
    return %c0_i32, %c0_i32_0 : i32, i32
  }
  func.func @transform_2(%arg0: i32, %arg1: i32) -> (i32, i32) {
    %c0_i32 = arith.constant 0 : i32
    %c0_i32_0 = arith.constant 0 : i32
    %c0_i32_1 = arith.constant 0 : i32
    return %c0_i32, %c0_i32_0 : i32, i32
  }
  func.func @transform_3(%arg0: i32, %arg1: i32) -> (i32, i32, i32) {
    %c0_i32 = arith.constant 0 : i32
    %c0_i32_0 = arith.constant 0 : i32
    return %arg0, %c0_i32, %arg1 : i32, i32, i32
  }
}

</mosaic_0001>

<bundles_post_ra>
// kernel: tpu_custom_call.1
= control target key start
LH: loop header
LB: loop body
LE: loop exit
PB: predicated region body
PF: predicated region fallthrough
CT: control target
= control target key end

     0   :  { %8 = vsyncpa [#allocation3], 0  ;;  %s954_s0 = inlined_call_operand.hbm [shape: bf16[2,8,1024], index: 0, kind: input, shape index: {}]   ;;  %s955_s1 = inlined_call_operand.vmem [shape: bf16[4,8], index: 1, kind: input, shape index: {}]   ;;  %s956_s2 = inlined_call_operand.vmem [shape: f32[4,1], index: 2, kind: input, shape index: {}]   ;;  %s957_s3 = inlined_call_operand.hbm [shape: f32[2,4,1024], index: 3, kind: output, shape index: {}]  }
   0x1   :  { %10 = vsyncpa [#allocation3 + $0x1], 0 }
   0x2   :  { %11 = vsyncpa [#allocation4], 0 }
   0x3   :  { %13 = vsyncpa [#allocation4 + $0x1], 0  ;;  %s750_s12 = smov 0   ;;  %s752_s13 = smov 0  }
   0x4   :  { %s754_s14 = smov 0   ;;  %s756_s15 = smov 0  }
   0x5   :  { %s758_s16 = smov 0   ;;  %s760_s17 = smov 0  }
   0x6   :  { %s762_s18 = smov 0   ;;  %s764_s19 = smov 0  }
   0x7 LB: > { %s468_s20 = sadd.s32 4294967295, %s725_s19   ;;  %s469_s21 = sadd.s32 4294967294, %s725_s19   ;;  %s725_s19 = sphi %s764_s19, %s19_s19   ;;  %s721_s18 = sphi %s762_s18, %s974_s18   ;;  %s717_s17 = sphi %s760_s17, %s973_s17   ;;  %s713_s16 = sphi %s758_s16, %s972_s16   ;;  %s709_s15 = sphi %s756_s15, %s971_s15   ;;  %s705_s14 = sphi %s754_s14, %s970_s14   ;;  %s701_s13 = sphi %s752_s13, %s969_s13   ;;  %s697_s12 = sphi %s750_s12, %s968_s12  }
   0x8   : > { %s28_s22 = sadd.s32 1, %s717_s17  ;;  %s31_s23 = sadd.s32 1, %s721_s18 }
   0x9   : > { %p29_p0 = scmp.ge.s32.totalorder %s28_s22, 2  ;;  %s40_s24 = sadd.s32 1, %s705_s14 }
   0xa   : > { %p47_p1 = scmp.ne.s32.totalorder %s705_s14, %s701_s13  ;;  %p48_p2 = scmp.eq.s32.totalorder %s725_s19, 0 }
   0xb   : > { %s976_s22 = smov (%p29_p0, %s28_s22), 0  ;;  %s978_s23 = smov (!%p29_p0, %s31_s23), %s721_s18 }
   0xc   : > { %s36_s25 = ssub.s32 %s717_s17, %s976_s22  ;;  %p803_p3 = por %p48_p2, %p47_p1 }
   0xd   : > { %p33_p4 = scmp.ge.s32.totalorder %s978_s23, 2  ;;  %p53_p5 = scmp.ne.s32.totalorder %s701_s13, %s697_s12 }
   0xe   : > { %p54_p6 = scmp.eq.s32.totalorder %s468_s20, 0  ;;  %p121_p7 = scmp.eq.s32.totalorder %s468_s20, 3 }
   0xf   : > { %s980_s23 = smov (%p33_p4, %s978_s23), 0  ;;  %p127_p10 = scmp.eq.s32.totalorder %s469_s21, 3 }
  0x10   : > { %p811_p8 = por %p54_p6, %p53_p5  ;;  %p815_p9 = por %p121_p7, %p47_p1 }
  0x11   : > { %s35_s29 = ssub.s32 %s721_s18, %s980_s23  ;;  %p821_p12 = por %p127_p10, %p53_p5 }
  0x12   : > { %s961_s28 = scalar_select %p815_p9, 1, 0 }
  0x13   : > { %s37_s30 = sor.u32 %s36_s25, %s35_s29  ;;  %p509_p13 = scmp.lt.s32.totalorder %s725_s19, 4 }
  0x14   : > { %p38_p11 = scmp.eq.s32.totalorder %s37_s30, 0  ;;  %s153_s5 = sand.u32 1, %s705_s14  }
  0x15   : > { %s962_s4 = scalar_select %p821_p12, 1, 0 }
  0x16   : > { %s828_s6 = scalar_select %p38_p11, %s705_s14, %s40_s24  }
  0x17   : > { %s472_s7 = sshll.u32 %s153_s5, 4  ;;  %s473_s8 = sshll.u32 %s717_s17, 2 }
  0x18   : > { %s474_s9 = sshll.u32 %s721_s18, 3  ;;  %s157_s10 = scalar_lea.vmem [#allocation2], %s472_s7 }
  0x19   : > { %s167_s11 = sshll.u32 %s157_s10, 4  ;;  %s163_s20 = sadd.s32 %s474_s9, %s473_s8  ;;  %s832_s11 = int_to_ptr.vmem [resolvable:$true] %s167_s11 }
  0x1a   : > { %s475_s21 = sshll.u32 %s163_s20, 6  ;;  %p836_p0 = pnand %p509_p13, %p803_p3 }
  0x1b   : > { %s843_s24 = scalar_lea.hbm %s954_s0, %s475_s21  ;;  %s154_s7 = scalar_lea.sflag [#allocation3], %s153_s5 }
  0x1c   : > { %s597_s8 = scalar_lea.hbm %s843_s24, 256  ;;  %p599_p3 = pneg %p836_p0 }
  0x1d   : > { %p598_p4 = scmp.ne.s32.totalorder %s843_s24, %s597_s8  ;;  %s602_s10 = scalar_lea.hbm %s954_s0, 1024 }
  0x1e   : > { %p603_p7 = scmp.lt.u32.totalorder %s843_s24, %s954_s0  ;;  %p604_p10 = scmp.lt.u32.totalorder %s602_s10, %s597_s8 }
  0x1f   : > { %p600_p5 = pnand %p599_p3, %p598_p4  ;;  %p606_p13 = scmp.lt.u32.totalorder %s597_s8, %s843_s24 }
  0x20   : > { %p605_p11 = por %p604_p10, %p603_p7 }
  0x21   : > { %p601_p6 = pneg %p600_p5 }
  0x22   : > { %p607_p1 = por %p606_p13, %p605_p11 }
  0x24   : > { %p608_p2 = pnand %p607_p1, %p601_p6 }
  0x26   : > { %611 = shalt.err (!%p608_p2)
}
  0x27   : > { %s612_s5 = scalar_lea.vmem %s832_s11, 256  ;;  %s727_s29 = smov [#allocation2]  }
  0x28   : > { %p613_p4 = scmp.ne.s32.totalorder %s832_s11, %s612_s5  ;;  %s617_s30 = sshll.u32 %s727_s29, 4  ;;  %s618_s30 = int_to_ptr.vmem [resolvable:$false] %s617_s30 }
  0x29   : > { %s619_s26 = scalar_lea.vmem %s618_s30, 512  ;;  %p620_p9 = scmp.lt.s32.totalorder %s832_s11, %s618_s30 }
  0x2a   : > { %p615_p5 = pnand %p613_p4, %p599_p3  ;;  %p621_p7 = scmp.lt.s32.totalorder %s619_s26, %s612_s5 }
  0x2c   : > { %p616_p12 = pneg %p615_p5  ;;  %p622_p10 = por %p621_p7, %p620_p9 }
  0x2e   : > { %p623_p11 = pnand %p622_p10, %p616_p12 }
  0x30   : > { %626 = shalt.err (!%p623_p11)
}
  0x31   : > { %504 = dma.hbm_to_vmem [thread:$0]  (!%p836_p0), %s843_s24, 256, %s832_s11, %s154_s7  }
  0x32   : > { %p964_p1 = scmp.lt.s32.totalorder %s725_s19, 5  ;;  %p965_p2 = scmp.ge.s32.totalorder %s725_s19, 1 }
  0x34   : > { %p173_p3 = pnand %p965_p2, %p964_p1 }
  0x35   : > { %s877_s8 = sand.u32 (!%p173_p3), 1, %s701_s13  }
  0x36   : > { %176 = sbr.rel (%p173_p3) target bundleno = 330 (0x14a), region = 32  ;;  %s477_s9 = sshll.u32 (!%p173_p3), %s877_s8, 4 }
  0x37   : > { %s179_s10 = scalar_lea.sflag (!%p173_p3), [#allocation3], %s877_s8  ;;  %s182_s25 = scalar_lea.vmem (!%p173_p3), [#allocation2], %s477_s9 }
  0x3d   : > { %688 = dma.done.wait (%p811_p8), %s179_s10, 256  }
  0x3e   : > { %690 = vsyncadd (%p811_p8), %s179_s10, 4294967040  ;;  %v728_v0 = vmov 0   ;;  %v209_v1 = vld [vmem:[%s182_s25] sm:$0xff]  ;;  %vm231_vm0 = vcmask 1043456   ;;  %v210_v2 = vld [vmem:[%s182_s25 + $0x8] sm:$0xff]  ;;  %vm227_vm1 = vcmask 64512  }
  0x3f   : > { %276 = vmatprep.mubr.bf16.mxu0 %v728_v0  ;;  %317 = vmatprep.mubr.bf16.mxu1 %v728_v0  ;;  %v480_v3 = vcombine.high %v209_v1, %v209_v1  ;;  %v482_v4 = vcombine.high %v210_v2, %v210_v2  ;;  %v479_v5 = vcombine.low %v209_v1, %v209_v1  ;;  %v211_v7 = vld [vmem:[%s956_s2] sm:$0xf]  ;;  %s492_s20 = sshll.u32 %s709_s15, 2  ;;  %s493_s21 = sshll.u32 %s713_s16, 3 }
  0x40   : > { %576 = vset.pattern.permute.xlu0 %v728_v0  ;;  %v481_v6 = vcombine.low %v210_v2, %v210_v2  ;;  %v208_v10 = vld [vmem:[%s955_s1] sm:$0x3]  ;;  %s377_s5 = sadd.s32 %s493_s21, %s492_s20  ;;  %s204_s30 = scalar_lea.vmem [#allocation5], %s477_s9 }
  0x41   : > { %214 = vperm.xlu0 %576, %v211_v7   ;;  %483 = vmatprep.subr.msk.bf16.mxu0 %vm231_vm0, %v480_v3  ;;  %v233_v8 = vsel %vm231_vm0, %v479_v5, 0  ;;  %s494_s29 = sshll.u32 %s377_s5, 6  ;;  %s381_s26 = sshll.u32 %s204_s30, 4  ;;  %s902_s26 = int_to_ptr.vmem [resolvable:$true] %s381_s26 }
  0x42   : > { %485 = vmatprep.subr.msk.bf16.mxu1 %vm231_vm0, %v482_v4  ;;  %v239_v9 = vsel %vm231_vm0, %v481_v6, 0  ;;  %245 = vmatpush1.bf16.msra.mxu0 %v233_v8  ;;  %s900_s16 = scalar_lea.hbm %s957_s3, %s494_s29  ;;  %s365_s25 = scalar_lea.sflag [#allocation4], %s877_s8 }
  0x43   : > { %286 = vmatpush1.bf16.msra.mxu1 %v239_v9  ;;  %s627_s11 = scalar_lea.vmem %s902_s26, 256  ;;  %p966_p9 = scmp.ne.s32.totalorder %s961_s28, 0 }
  0x44   : > { %p628_p8 = scmp.ne.s32.totalorder %s902_s26, %s627_s11  ;;  %s729_s9 = smov [#allocation5]  }
  0x45   : > { %484 = vmatmul.mubr.msk.bf16.vlgmr.msra.gmra.mrb[0].mxu0 %vm227_vm1, %v208_v10  ;;  %s631_s24 = sshll.u32 %s729_s9, 4  ;;  %s632_s24 = int_to_ptr.vmem [resolvable:$false] %s631_s24 }
  0x46   : > { %486 = vmatmul.mubr.msk.bf16.vlgmr.msra.gmra.mrb[0].mxu1 %vm227_vm1, %v208_v10  ;;  %p629_p12 = pnand %p628_p8, %p966_p9  ;;  %s633_s27 = scalar_lea.vmem %s632_s24, 512 }
  0x47   : > { %p634_p6 = scmp.lt.s32.totalorder %s902_s26, %s632_s24  ;;  %p635_p13 = scmp.lt.s32.totalorder %s633_s27, %s627_s11 }
  0x48   : > { %p630_p0 = pneg %p629_p12 }
  0x49   : > { %p636_p4 = por %p635_p13, %p634_p6 }
  0x4b   : > { %p637_p5 = pnand %p636_p4, %p630_p0 }
  0xc0   : > { %v215_v11 = vpop.permute.xlu0 %214 }
 0x118   : > { %v278_v12 = vpop.f32.mrb[0].mxu0 }
 0x119   : > { %v319_v13 = vpop.f32.mrb[0].mxu1  ;;  %v279_v14 = vadd.f32 %v278_v12, %v215_v11  ;;  %v280_v16 = vpop.f32.mrb[1].mxu0 }
 0x11a   : > { %v320_v15 = vadd.f32 %v319_v13, %v215_v11  ;;  %v321_v17 = vpop.f32.mrb[1].mxu1  ;;  %v281_v18 = vadd.f32 %v280_v16, %v215_v11  ;;  %v282_v20 = vpop.f32.mrb[2].mxu0 }
 0x11b   : > { %v322_v19 = vadd.f32 %v321_v17, %v215_v11  ;;  %v323_v21 = vpop.f32.mrb[2].mxu1  ;;  %v487_v22 = vmul.f32 -1.442695, %v279_v14  ;;  %v283_v24 = vpop.f32.mrb[3].mxu0 }
 0x11c   : > { %v489_v23 = vmul.f32 -1.442695, %v320_v15  ;;  %v324_v25 = vpop.f32.mrb[3].mxu1  ;;  %v488_v26 = vmul.f32 -1.442695, %v281_v18 }
 0x11d   : > { %v490_v27 = vmul.f32 -1.442695, %v322_v19  ;;  %581 = vpow2.f32 %v487_v22 }
 0x11e   : > { %583 = vpow2.f32 %v489_v23 }
 0x11f   : > { %585 = vpow2.f32 %v488_v26 }
 0x120   : > { %587 = vpow2.f32 %v490_v27 }
 0x127   : > { %v582_v28 = vpop.eup %581 }
 0x128   : > { %v584_v29 = vpop.eup %583  ;;  %v338_v30 = vadd.f32 1.0, %v582_v28 }
 0x129   : > { %v586_v31 = vpop.eup %585  ;;  %v340_v32 = vadd.f32 1.0, %v584_v29 }
 0x12a   : > { %v588_v33 = vpop.eup %587  ;;  %589 = vrcp.f32 %v338_v30  ;;  %v339_v34 = vadd.f32 1.0, %v586_v31 }
 0x12b   : > { %591 = vrcp.f32 %v340_v32  ;;  %v341_v35 = vadd.f32 1.0, %v588_v33 }
 0x12c   : > { %593 = vrcp.f32 %v339_v34 }
 0x12d   : > { %595 = vrcp.f32 %v341_v35 }
 0x134   : > { %v590_v36 = vpop.eup %589 }
 0x135   : > { %v592_v37 = vpop.eup %591  ;;  %v350_v38 = vmul.f32 %v590_v36, %v279_v14 }
 0x136   : > { %v594_v39 = vpop.eup %593  ;;  %v352_v40 = vmul.f32 %v592_v37, %v320_v15 }
 0x137   : > { %v596_v41 = vpop.eup %595  ;;  %v351_v42 = vmul.f32 %v594_v39, %v281_v18 }
 0x138   : > { %v353_v43 = vmul.f32 %v596_v41, %v322_v19 }
 0x139   : > { %v358_v44 = vcombine.low %v350_v38, %v351_v42 }
 0x13a   : > { %v359_v45 = vcombine.low %v352_v40, %v353_v43 }
 0x13b   : > { %362 = vst [vmem:[%s204_s30] sm:$0xff] %v358_v44 }
 0x13c   : > { %363 = vst [vmem:[%s204_s30 + $0x8] sm:$0xff] %v359_v45 }
 0x13d   : > { %640 = shalt.err (!%p637_p5)
}
 0x13e   : > { %s641_s8 = scalar_lea.hbm %s900_s16, 256  ;;  %s645_s21 = scalar_lea.hbm %s957_s3, 1024 }
 0x13f   : > { %p642_p7 = scmp.ne.s32.totalorder %s900_s16, %s641_s8  ;;  %p646_p1 = scmp.lt.u32.totalorder %s900_s16, %s957_s3 }
 0x140   : > { %p647_p2 = scmp.lt.u32.totalorder %s645_s21, %s641_s8  ;;  %p649_p8 = scmp.lt.u32.totalorder %s641_s8, %s900_s16 }
 0x141   : > { %p643_p10 = pnand %p642_p7, %p966_p9 }
 0x142   : > { %p648_p3 = por %p647_p2, %p646_p1 }
 0x143   : > { %p644_p11 = pneg %p643_p10 }
 0x144   : > { %p650_p12 = por %p649_p8, %p648_p3 }
 0x146   : > { %p651_p0 = pnand %p650_p12, %p644_p11 }
 0x148   : > { %654 = shalt.err (!%p651_p0)
}
 0x149   : > { %499 = dma.vmem_to_hbm [thread:$0]  (%p966_p9), %s902_s26, 256, %s900_s16, %s365_s25  }
 0x14a PF: > { %p510_p6 = scmp.ge.s32.totalorder %s725_s19, 2  ;;  %s393_s30 = sand.u32 1, %s697_s12  }
 0x14b   : > { %p967_p13 = scmp.ne.s32.totalorder %s962_s4, 0  ;;  %s394_s10 = scalar_lea.sflag [#allocation4], %s393_s30 }
 0x14d   : > { %p506_p4 = pnand %p510_p6, %p967_p13 }
 0x14f   : > { %692 = dma.done.wait (!%p506_p4), %s394_s10, 256  }
 0x150   : > { %694 = vsyncadd (!%p506_p4), %s394_s10, 4294967040  ;;  %s19_s19 = sadd.s32 1, %s725_s19   ;;  %s968_s12 = smov %s701_s13 }
 0x151   : > { %p16_p5 = scmp.ge.s32.totalorder %s19_s19, 6   ;;  %s969_s13 = smov %s705_s14 }
 0x152   : > { %s970_s14 = smov %s828_s6  ;;  %s971_s15 = smov %s717_s17 }
 0x153   : > { %s972_s16 = smov %s721_s18  ;;  %s973_s17 = smov %s976_s22 }
 0x154   : > { %s974_s18 = smov %s980_s23  ;;  %18 = sbr.rel (!%p16_p5) target bundleno = 7 (0x7), region = 77 }
 0x15b   :  { %399 = vsyncpa [#allocation3], 1 }
 0x15c   :  { %401 = vsyncpa [#allocation3 + $0x1], 1 }
 0x15d   :  { %402 = vsyncpa [#allocation4], 1 }
 0x15e   :  { %404 = vsyncpa [#allocation4 + $0x1], 1 }

</bundles_post_ra>
